<compile_context>
chip_gen: v7x
topology: tpu7x:2x2x1
jax: 0.10.0
libtpu: 0.0.40
codegen_flags: <defaults>
</compile_context>

<pallas_src>
import functools
import math

import numpy as np
import jax
import jax.numpy as jnp
from jax.experimental import pallas as pl
from jax.experimental.pallas import tpu as pltpu

# ---------------- config (mirrors `args`) ----------------
HIDDEN = 32        # args.recdim
N_LAYERS = 3       # args.layer
GAMMA = -0.45      # args.gamma
ZETA = 1.05        # args.zeta
LAMBDA0 = 1e-4     # args.lambda0
BPR_BATCH = 8      # args.bpr_batch


def _round_up(x, m):
    return (x + m - 1) // m * m


# ---------------- kernel 1: fused edge attention MLP + hard-concrete gate ----------------
def _edge_attn_kernel(f_ref, noise_ref, wh_ref, bh_ref, wa1_ref, ba1_ref,
                      wa2_ref, ba2_ref, mask_ref, w_ref, *,
                      beta, gamma, zeta, n_edges, tile_e):
    i = pl.program_id(0)

    # fused 2H-wide MLP (edges on lanes); bf16 MXU operands, f32 accumulation:
    #   [h1; h2] = relu(blockdiag(W_nb, W_self)^T @ [f1; f2] + [b_nb; b_self])
    f = f_ref[...]                                                       # (2H, TE) bf16
    h = jnp.maximum(
        jnp.dot(wh_ref[...], f, preferred_element_type=jnp.float32)
        + bh_ref[...], 0.0)                                              # (2H, TE) f32
    a = jnp.maximum(
        jnp.dot(wa1_ref[...], h.astype(jnp.bfloat16),
                preferred_element_type=jnp.float32) + ba1_ref[...], 0.0)  # (H, TE)
    w = (jnp.dot(wa2_ref[...], a.astype(jnp.bfloat16),
                 preferred_element_type=jnp.float32)
         + ba2_ref[...])                                                 # (1, TE) lane-dense

    # lane-validity mask: zero out the edge padding in both outputs
    colid = i * tile_e + jax.lax.broadcasted_iota(jnp.int32, (1, tile_e), 1)
    valid = colid < n_edges

    # hard_concrete_sample (training=True); noise logits log(u)-log(1-u) from host
    # TODO(synk): re-enable in-kernel pltpu.prng_* noise once interpret mode supports it.
    gate = jax.nn.sigmoid((noise_ref[...] + w) / beta)
    clipped = jnp.clip(gate * (zeta - gamma) + gamma, 0.0, 1.0)
    mask_ref[...] = jnp.where(valid, clipped, 0.0)
    w_ref[...] = jnp.where(valid, w, 0.0)       # log-alpha, consumed by L0 in glue


def edge_attention(f12t_bf16, noise, pp, temperature, n_edges, tile_e):
    two_h, e_pad = f12t_bf16.shape
    hidden = two_h // 2
    kernel = functools.partial(
        _edge_attn_kernel, beta=float(temperature), gamma=GAMMA, zeta=ZETA,
        n_edges=n_edges, tile_e=tile_e)
    mask, w = pl.pallas_call(
        kernel,
        out_shape=(jax.ShapeDtypeStruct((1, e_pad), jnp.float32),
                   jax.ShapeDtypeStruct((1, e_pad), jnp.float32)),
        grid=(e_pad // tile_e,),
        in_specs=[
            pl.BlockSpec((two_h, tile_e), lambda i: (0, i)),   # [f1;f2]^T tile (bf16)
            pl.BlockSpec((1, tile_e), lambda i: (0, i)),       # noise logits tile
            pl.BlockSpec((two_h, two_h), lambda i: (0, 0)),    # Wh (block-diag, bf16)
            pl.BlockSpec((two_h, 1), lambda i: (0, 0)),        # bh (f32)
            pl.BlockSpec((hidden, two_h), lambda i: (0, 0)),   # Wa1 (stacked, bf16)
            pl.BlockSpec((hidden, 1), lambda i: (0, 0)),       # ba1 (f32)
            pl.BlockSpec((1, hidden), lambda i: (0, 0)),       # Wa2 (bf16)
            pl.BlockSpec((1, 1), lambda i: (0, 0)),            # ba2 (f32)
        ],
        out_specs=(pl.BlockSpec((1, tile_e), lambda i: (0, i)),
                   pl.BlockSpec((1, tile_e), lambda i: (0, i))),
        compiler_params=pltpu.CompilerParams(
            dimension_semantics=("parallel",)),   # no cross-tile state -> megacore-safe
    )(f12t_bf16, noise, pp["Wh"], pp["bh"], pp["Wa1"], pp["ba1"],
      pp["Wa2"], pp["ba2"])
    return mask, w


# ---------------- kernel 2: sparse (CSR segment-sum) propagation ----------------
def _prop_kernel(cs_ref, nc_ref, srow_ref, contrib_ref, o_ref, *, tm):
    t = pl.program_id(0)     # node row tile
    j = pl.program_id(1)     # edge chunk within this row tile's range

    @pl.when(j == 0)
    def _init():
        o_ref[...] = jnp.zeros_like(o_ref)

    @pl.when(j < nc_ref[t])
    def _accumulate():
        rows = srow_ref[...]                                           # (1, TE) int32
        local = jax.lax.broadcasted_iota(jnp.int32, (tm, 1), 0) + t * tm
        onehot = (rows == local).astype(jnp.float32)                   # (TM, TE)
        # segment-sum as an MXU matmul, accumulated straight into the f32 output
        o_ref[...] += jnp.dot(onehot, contrib_ref[...],
                              preferred_element_type=jnp.float32)


def sparse_propagate(contrib_pad, meta):
    tm, te = meta["tm"], meta["te"]
    n_blocks = meta["n_blocks"]
    hidden = contrib_pad.shape[1]

    def chunk_idx(t, j, cs_ref, nc_ref):
        return jnp.minimum(cs_ref[t] + j, n_blocks - 1)

    kernel = functools.partial(_prop_kernel, tm=tm)
    return pl.pallas_call(
        kernel,
        out_shape=jax.ShapeDtypeStruct((meta["n_pad"], hidden), jnp.float32),
        grid_spec=pltpu.PrefetchScalarGridSpec(
            num_scalar_prefetch=2,
            grid=(meta["n_row_tiles"], meta["max_chunks"]),
            in_specs=[
                pl.BlockSpec((1, te),
                             lambda t, j, cs, nc: (0, chunk_idx(t, j, cs, nc))),
                pl.BlockSpec((te, hidden),
                             lambda t, j, cs, nc: (chunk_idx(t, j, cs, nc), 0)),
            ],
            out_specs=pl.BlockSpec((tm, hidden), lambda t, j, cs, nc: (t, 0))),
        compiler_params=pltpu.CompilerParams(
            dimension_semantics=("parallel", "arbitrary")),
    )(meta["chunk_start"], meta["num_chunks"], meta["srow2d"], contrib_pad)


# ---------------- host-side graph metadata (structure only, built once) ----------------
def build_graph_meta(row_np, col_np, n_nodes, tm_cap=256, te_cap=512,
                     attn_tile_cap=4096):
    n_edges = int(row_np.shape[0])

    # propagation tiling
    tm = min(tm_cap, _round_up(n_nodes, 8))
    te = min(te_cap, _round_up(n_edges, 128))
    n_pad = _round_up(n_nodes, tm)
    e_pad = _round_up(n_edges, te)

    order = np.argsort(row_np, kind="stable")
    srow = row_np[order]
    scol = col_np[order]

    n_row_tiles = n_pad // tm
    boundaries = np.arange(1, n_row_tiles + 1) * tm
    tile_ptr = np.concatenate([[0], np.searchsorted(srow, boundaries)])
    cs = tile_ptr[:-1] // te
    ce = -(-tile_ptr[1:] // te)                       # ceil div
    nchunks = np.where(tile_ptr[1:] > tile_ptr[:-1], ce - cs, 0)
    max_chunks = int(max(1, int(nchunks.max()) if nchunks.size else 1))

    srow_pad = np.full((e_pad,), -1, np.int32)        # -1 never matches a real row
    srow_pad[:n_edges] = srow

    # attention tiling (edges on lanes)
    attn_tile_e = min(attn_tile_cap, _round_up(n_edges, 128))
    attn_e_pad = _round_up(n_edges, attn_tile_e)

    return {
        "n_edges": n_edges,
        "order": jnp.asarray(order, jnp.int32),
        "scol": jnp.asarray(scol, jnp.int32),
        "srow2d": jnp.asarray(srow_pad.reshape(1, e_pad)),
        "chunk_start": jnp.asarray(cs.astype(np.int32)),
        "num_chunks": jnp.asarray(nchunks.astype(np.int32)),
        "tm": tm, "te": te, "n_pad": n_pad, "e_pad": e_pad,
        "n_blocks": e_pad // te, "n_row_tiles": n_row_tiles,
        "max_chunks": max_chunks,
        "attn_tile_e": attn_tile_e, "attn_e_pad": attn_e_pad,
    }


# ---------------- per-layer forward ----------------
def denoising_layer(x, pp, row, col, meta, noise, temperature, n_nodes):
    n_edges = meta["n_edges"]
    tile_e, e_pad_a = meta["attn_tile_e"], meta["attn_e_pad"]

    # edge feature gather directly in the (2H, E) edges-on-lanes layout (glue)
    xt = x.T                                                          # (H, N)
    f12t = jnp.concatenate([xt[:, row], xt[:, col]], axis=0)          # (2H, E)
    f12t = jnp.pad(f12t, ((0, 0), (0, e_pad_a - n_edges))).astype(jnp.bfloat16)

    mask_pad, w_pad = edge_attention(f12t, noise, pp, temperature, n_edges, tile_e)
    mask = mask_pad[0, :n_edges]
    w = w_pad[0, :n_edges]

    # l0_norm: mean(sigmoid(log_alpha - beta * log(-gamma/zeta)))   (O(E) glue)
    l0 = jnp.mean(jax.nn.sigmoid(w - float(temperature) * math.log(-GAMMA / ZETA)))

    # symmetric normalization: d = clamp((rowsum + 1e-6)^-0.5, 0, 10)  (O(E) glue)
    rowsum = jnp.zeros((n_nodes,), jnp.float32).at[row].add(mask) + 1e-6
    d = jnp.clip(jax.lax.rsqrt(rowsum), 0.0, 10.0)
    vals = mask * d[row] * d[col]

    # sparse propagation:  x_new[r] = sum_{e: row[e]=r} vals[e] * x[col[e]]
    # gather + scale in glue (O(E*H)), segment-sum on the MXU in Pallas.
    svals = vals[meta["order"]]
    contrib = svals[:, None] * x[meta["scol"], :]                     # (E, H) f32
    contrib = jnp.pad(contrib, ((0, meta["e_pad"] - n_edges), (0, 0)))
    x_new = sparse_propagate(contrib, meta)[:n_nodes]
    return x_new, l0


# ---------------- full forward (== DenoisingNet.forward) ----------------
def denoising_forward(features, packed_params, row, col, meta, users, items,
                      neg_items, temperature, n_mashups, n_apis, noise_key):
    n_nodes = features.shape[0]
    x = features                      # features.detach()
    embeds_sum = features             # sum(embedsLst) accumulator
    l0_total = jnp.zeros((), jnp.float32)

    for layer in range(N_LAYERS):
        k = jax.random.fold_in(noise_key, layer)
        u = jax.random.uniform(k, (1, meta["attn_e_pad"]), jnp.float32,
                               minval=1e-7, maxval=1.0 - 1e-7)
        noise = jnp.log(u) - jnp.log(1.0 - u)        # uniform noise logits (host)
        x, l0 = denoising_layer(x, packed_params[layer], row, col, meta,
                                noise, temperature, n_nodes)
        embeds_sum = embeds_sum + x
        l0_total = l0_total + l0

    # torch.split(x, [n_mashups, n_apis], dim=0)
    x_user = embeds_sum[:n_mashups]
    x_item = embeds_sum[n_mashups:n_mashups + n_apis]
    anc = x_user[users]
    pos = x_item[items]
    neg = x_item[neg_items]

    # BPR + reg losses: tiny (B=8, H=32) -> plain JAX; log_sigmoid for stability.
    diff = jnp.sum(anc * pos, axis=-1) - jnp.sum(anc * neg, axis=-1)
    bpr_loss = -jnp.sum(jax.nn.log_sigmoid(diff)) / BPR_BATCH
    reg_loss = 0.5 * (jnp.sum(anc * anc) + jnp.sum(pos * pos)
                      + jnp.sum(neg * neg)) / users.shape[0]
    return bpr_loss + reg_loss + l0_total * LAMBDA0


# ---------------- parameter init + host-side weight packing ----------------
def init_params(key, hidden):
    params = []
    s1 = 1.0 / math.sqrt(hidden)
    s2 = 1.0 / math.sqrt(2 * hidden)
    for layer in range(N_LAYERS):
        ks = jax.random.split(jax.random.fold_in(key, layer), 10)
        p = {
            # nblayers_l / selflayers_l : Linear(H, H) (weights stored (in, out))
            "W_nb":     jax.random.uniform(ks[0], (hidden, hidden), jnp.float32, -s1, s1),
            "b_nb":     jax.random.uniform(ks[1], (1, hidden), jnp.float32, -s1, s1),
            "W_self":   jax.random.uniform(ks[2], (hidden, hidden), jnp.float32, -s1, s1),
            "b_self":   jax.random.uniform(ks[3], (1, hidden), jnp.float32, -s1, s1),
            # attentions_l first Linear(2H, H), split into the two concat halves
            "W_a1_top": jax.random.uniform(ks[4], (hidden, hidden), jnp.float32, -s2, s2),
            "W_a1_bot": jax.random.uniform(ks[5], (hidden, hidden), jnp.float32, -s2, s2),
            "b_a1":     jax.random.uniform(ks[6], (1, hidden), jnp.float32, -s2, s2),
            # attentions_l second Linear(H, 1)
            "W_a2":     jax.random.uniform(ks[7], (1, hidden), jnp.float32, -s1, s1),
            "b_a2":     jax.random.uniform(ks[8], (1, 1), jnp.float32, -s1, s1),
        }
        params.append(p)
    return params


def pack_params(params):
    """Pre-pack per-layer weights once on the host for the fused, transposed
    (edges-on-lanes) edge-attention kernel.  Matmul operands go to bf16,
    biases stay f32 (added to the f32 accumulator)."""
    packed = []
    for p in params:
        hidden = p["W_nb"].shape[0]
        wh = jnp.zeros((2 * hidden, 2 * hidden), jnp.float32)
        wh = wh.at[:hidden, :hidden].set(p["W_nb"].T)
        wh = wh.at[hidden:, hidden:].set(p["W_self"].T)
        packed.append({
            "Wh":  wh.astype(jnp.bfloat16),                                       # (2H, 2H)
            "bh":  jnp.concatenate([p["b_nb"].T, p["b_self"].T], axis=0),         # (2H, 1) f32
            "Wa1": jnp.concatenate([p["W_a1_top"].T, p["W_a1_bot"].T],
                                   axis=1).astype(jnp.bfloat16),                  # (H, 2H)
            "ba1": p["b_a1"].T,                                                   # (H, 1) f32
            "Wa2": p["W_a2"].astype(jnp.bfloat16),                                # (1, H)
            "ba2": p["b_a2"],                                                     # (1, 1) f32
        })
    return packed


if __name__ == "__main__":
    key = jax.random.PRNGKey(0)
    k_feat, k_par, k_noise = jax.random.split(key, 3)

    n_mashups, n_apis = 8, 8
    n_nodes, hidden = n_mashups + n_apis, HIDDEN

    features = jax.random.normal(k_feat, (n_nodes, hidden), jnp.float32) * 0.1
    packed = pack_params(init_params(k_par, hidden))

    # symmetric bipartite adjacency: user u <-> items (u, u+1, u+3) mod n_apis
    rows, cols = [], []
    for u in range(n_mashups):
        for off in (0, 1, 3):
            i = (u + off) % n_apis
            rows += [u, n_mashups + i]
            cols += [n_mashups + i, u]
    row_np = np.array(rows, np.int32)
    col_np = np.array(cols, np.int32)     # 48 edges
    row = jnp.asarray(row_np)
    col = jnp.asarray(col_np)

    meta = build_graph_meta(row_np, col_np, n_nodes)

    users = jnp.arange(BPR_BATCH, dtype=jnp.int32) % n_mashups
    items = (jnp.arange(BPR_BATCH, dtype=jnp.int32) + 1) % n_apis
    neg_items = (jnp.arange(BPR_BATCH, dtype=jnp.int32) + 4) % n_apis
    temperature = 0.5

    loss = denoising_forward(features, packed, row, col, meta, users, items,
                             neg_items, temperature, n_mashups, n_apis, k_noise)
    jax.block_until_ready(loss)
    assert bool(jnp.isfinite(loss))
    print("KERNEL_OK")
</pallas_src>

<mosaic_0001>
module attributes {stable_mosaic.version = 11 : i64} {
  func.func @_edge_attn_kernel(%arg0: i32, %arg1: memref<64x128xbf16, #tpu.memory_space<vmem>>, %arg2: memref<1x128xf32, #tpu.memory_space<vmem>>, %arg3: memref<64x64xbf16, #tpu.memory_space<vmem>>, %arg4: memref<64x1xf32, #tpu.memory_space<vmem>>, %arg5: memref<32x64xbf16, #tpu.memory_space<vmem>>, %arg6: memref<32x1xf32, #tpu.memory_space<vmem>>, %arg7: memref<1x32xbf16, #tpu.memory_space<vmem>>, %arg8: memref<1x1xf32, #tpu.memory_space<vmem>>, %arg9: memref<1x128xf32, #tpu.memory_space<vmem>>, %arg10: memref<1x128xf32, #tpu.memory_space<vmem>>) attributes {dimension_semantics = [#tpu.dimension_semantics<parallel>], iteration_bounds = array<i64: 1>, scalar_prefetch = 0 : i64, scratch_operands = 0 : i64, tpu.core_type = #tpu.core_type<tc>, window_params = [{transform_indices = @transform_0, window_bounds = array<i64: 64, 128>}, {transform_indices = @transform_1, window_bounds = array<i64: 1, 128>}, {pipeline_mode = #tpu.pipeline_mode<synchronous>, transform_indices = @transform_2, window_bounds = array<i64: 64, 64>}, {pipeline_mode = #tpu.pipeline_mode<synchronous>, transform_indices = @transform_3, window_bounds = array<i64: 64, 1>}, {pipeline_mode = #tpu.pipeline_mode<synchronous>, transform_indices = @transform_4, window_bounds = array<i64: 32, 64>}, {pipeline_mode = #tpu.pipeline_mode<synchronous>, transform_indices = @transform_5, window_bounds = array<i64: 32, 1>}, {pipeline_mode = #tpu.pipeline_mode<synchronous>, transform_indices = @transform_6, window_bounds = array<i64: 1, 32>}, {pipeline_mode = #tpu.pipeline_mode<synchronous>, transform_indices = @transform_7, window_bounds = array<i64: 1, 1>}, {transform_indices = @transform_8, window_bounds = array<i64: 1, 128>}, {transform_indices = @transform_9, window_bounds = array<i64: 1, 128>}]} {
    %c0 = arith.constant 0 : index
    %c0_0 = arith.constant 0 : index
    %0 = vector.load %arg1[%c0, %c0_0] : memref<64x128xbf16, #tpu.memory_space<vmem>>, vector<64x128xbf16>
    %c0_1 = arith.constant 0 : index
    %c0_2 = arith.constant 0 : index
    %1 = vector.load %arg3[%c0_1, %c0_2] : memref<64x64xbf16, #tpu.memory_space<vmem>>, vector<64x64xbf16>
    %cst = arith.constant dense<0.000000e+00> : vector<64x128xf32>
    %2 = tpu.matmul %1, %0, %cst {dimension_numbers = #tpu.dot_dimension_numbers<[1], [0], [0], [1], [0, 0, 1, 1], [], []>} : vector<64x64xbf16>, vector<64x128xbf16>, vector<64x128xf32> -> vector<64x128xf32>
    %c0_3 = arith.constant 0 : index
    %c0_4 = arith.constant 0 : index
    %3 = vector.load %arg4[%c0_3, %c0_4] : memref<64x1xf32, #tpu.memory_space<vmem>>, vector<64x1xf32>
    %4 = vector.broadcast %3 : vector<64x1xf32> to vector<64x128xf32>
    %5 = arith.addf %2, %4 : vector<64x128xf32>
    %cst_5 = arith.constant 0.000000e+00 : f32
    %6 = vector.broadcast %cst_5 : f32 to vector<64x128xf32>
    %7 = arith.maximumf %5, %6 : vector<64x128xf32>
    %c0_6 = arith.constant 0 : index
    %c0_7 = arith.constant 0 : index
    %8 = vector.load %arg5[%c0_6, %c0_7] : memref<32x64xbf16, #tpu.memory_space<vmem>>, vector<32x64xbf16>
    %9 = arith.truncf %7 : vector<64x128xf32> to vector<64x128xbf16>
    %cst_8 = arith.constant dense<0.000000e+00> : vector<32x128xf32>
    %10 = tpu.matmul %8, %9, %cst_8 {dimension_numbers = #tpu.dot_dimension_numbers<[1], [0], [0], [1], [0, 0, 1, 1], [], []>} : vector<32x64xbf16>, vector<64x128xbf16>, vector<32x128xf32> -> vector<32x128xf32>
    %c0_9 = arith.constant 0 : index
    %c0_10 = arith.constant 0 : index
    %11 = vector.load %arg6[%c0_9, %c0_10] : memref<32x1xf32, #tpu.memory_space<vmem>>, vector<32x1xf32>
    %12 = vector.broadcast %11 : vector<32x1xf32> to vector<32x128xf32>
    %13 = arith.addf %10, %12 : vector<32x128xf32>
    %cst_11 = arith.constant 0.000000e+00 : f32
    %14 = vector.broadcast %cst_11 : f32 to vector<32x128xf32>
    %15 = arith.maximumf %13, %14 : vector<32x128xf32>
    %c0_12 = arith.constant 0 : index
    %c0_13 = arith.constant 0 : index
    %16 = vector.load %arg7[%c0_12, %c0_13] : memref<1x32xbf16, #tpu.memory_space<vmem>>, vector<1x32xbf16>
    %17 = arith.truncf %15 : vector<32x128xf32> to vector<32x128xbf16>
    %cst_14 = arith.constant dense<0.000000e+00> : vector<1x128xf32>
    %18 = tpu.matmul %16, %17, %cst_14 {dimension_numbers = #tpu.dot_dimension_numbers<[1], [0], [0], [1], [0, 0, 1, 1], [], []>} : vector<1x32xbf16>, vector<32x128xbf16>, vector<1x128xf32> -> vector<1x128xf32>
    %c0_15 = arith.constant 0 : index
    %c0_16 = arith.constant 0 : index
    %19 = vector.load %arg8[%c0_15, %c0_16] : memref<1x1xf32, #tpu.memory_space<vmem>>, vector<1x1xf32>
    %20 = vector.broadcast %19 : vector<1x1xf32> to vector<1x128xf32>
    %21 = arith.addf %18, %20 : vector<1x128xf32>
    %c128_i32 = arith.constant 128 : i32
    %22 = arith.muli %arg0, %c128_i32 : i32
    %23 = tpu.iota {dimensions = array<i32: 1>} : vector<1x128xi32>
    %24 = vector.broadcast %22 : i32 to vector<1x128xi32>
    %25 = arith.addi %24, %23 : vector<1x128xi32>
    %c48_i32 = arith.constant 48 : i32
    %26 = vector.broadcast %c48_i32 : i32 to vector<1x128xi32>
    %27 = arith.cmpi slt, %25, %26 : vector<1x128xi32>
    %c0_17 = arith.constant 0 : index
    %c0_18 = arith.constant 0 : index
    %28 = vector.load %arg2[%c0_17, %c0_18] : memref<1x128xf32, #tpu.memory_space<vmem>>, vector<1x128xf32>
    %29 = arith.addf %28, %21 : vector<1x128xf32>
    %cst_19 = arith.constant 5.000000e-01 : f32
    %30 = vector.broadcast %cst_19 : f32 to vector<1x128xf32>
    %31 = arith.divf %29, %30 : vector<1x128xf32>
    %32 = arith.negf %31 : vector<1x128xf32>
    %33 = math.exp %32 : vector<1x128xf32>
    %cst_20 = arith.constant 1.000000e+00 : f32
    %34 = vector.broadcast %cst_20 : f32 to vector<1x128xf32>
    %35 = arith.addf %34, %33 : vector<1x128xf32>
    %36 = arith.divf %34, %35 : vector<1x128xf32>
    %cst_21 = arith.constant 1.500000e+00 : f32
    %37 = vector.broadcast %cst_21 : f32 to vector<1x128xf32>
    %38 = arith.mulf %36, %37 : vector<1x128xf32>
    %cst_22 = arith.constant -4.500000e-01 : f32
    %39 = vector.broadcast %cst_22 : f32 to vector<1x128xf32>
    %40 = arith.addf %38, %39 : vector<1x128xf32>
    %cst_23 = arith.constant 0.000000e+00 : f32
    %cst_24 = arith.constant 1.000000e+00 : f32
    %41 = vector.broadcast %cst_23 : f32 to vector<1x128xf32>
    %42 = arith.maximumf %41, %40 : vector<1x128xf32>
    %43 = vector.broadcast %cst_24 : f32 to vector<1x128xf32>
    %44 = arith.minimumf %43, %42 : vector<1x128xf32>
    %cst_25 = arith.constant 0.000000e+00 : f32
    %45 = vector.broadcast %cst_25 : f32 to vector<1x128xf32>
    %46 = arith.select %27, %44, %45 : vector<1x128xi1>, vector<1x128xf32>
    %c0_26 = arith.constant 0 : index
    %c0_27 = arith.constant 0 : index
    %47 = vector.load %arg9[%c0_26, %c0_27] : memref<1x128xf32, #tpu.memory_space<vmem>>, vector<1x128xf32>
    tpu.vector_store %arg9[%c0_26, %c0_27], %46 {strides = array<i32>} : memref<1x128xf32, #tpu.memory_space<vmem>>, vector<1x128xf32>,
    %cst_28 = arith.constant 0.000000e+00 : f32
    %48 = vector.broadcast %cst_28 : f32 to vector<1x128xf32>
    %49 = arith.select %27, %21, %48 : vector<1x128xi1>, vector<1x128xf32>
    %c0_29 = arith.constant 0 : index
    %c0_30 = arith.constant 0 : index
    %50 = vector.load %arg10[%c0_29, %c0_30] : memref<1x128xf32, #tpu.memory_space<vmem>>, vector<1x128xf32>
    tpu.vector_store %arg10[%c0_29, %c0_30], %49 {strides = array<i32>} : memref<1x128xf32, #tpu.memory_space<vmem>>, vector<1x128xf32>,
    return
  }
  func.func @transform_0(%arg0: i32) -> (i32, i32) {
    %c0_i32 = arith.constant 0 : i32
    %c0_i32_0 = arith.constant 0 : i32
    return %c0_i32, %arg0 : i32, i32
  }
  func.func @transform_1(%arg0: i32) -> (i32, i32) {
    %c0_i32 = arith.constant 0 : i32
    %c0_i32_0 = arith.constant 0 : i32
    return %c0_i32, %arg0 : i32, i32
  }
  func.func @transform_2(%arg0: i32) -> (i32, i32) {
    %c0_i32 = arith.constant 0 : i32
    %c0_i32_0 = arith.constant 0 : i32
    %c0_i32_1 = arith.constant 0 : i32
    return %c0_i32, %c0_i32_0 : i32, i32
  }
  func.func @transform_3(%arg0: i32) -> (i32, i32) {
    %c0_i32 = arith.constant 0 : i32
    %c0_i32_0 = arith.constant 0 : i32
    %c0_i32_1 = arith.constant 0 : i32
    return %c0_i32, %c0_i32_0 : i32, i32
  }
  func.func @transform_4(%arg0: i32) -> (i32, i32) {
    %c0_i32 = arith.constant 0 : i32
    %c0_i32_0 = arith.constant 0 : i32
    %c0_i32_1 = arith.constant 0 : i32
    return %c0_i32, %c0_i32_0 : i32, i32
  }
  func.func @transform_5(%arg0: i32) -> (i32, i32) {
    %c0_i32 = arith.constant 0 : i32
    %c0_i32_0 = arith.constant 0 : i32
    %c0_i32_1 = arith.constant 0 : i32
    return %c0_i32, %c0_i32_0 : i32, i32
  }
  func.func @transform_6(%arg0: i32) -> (i32, i32) {
    %c0_i32 = arith.constant 0 : i32
    %c0_i32_0 = arith.constant 0 : i32
    %c0_i32_1 = arith.constant 0 : i32
    return %c0_i32, %c0_i32_0 : i32, i32
  }
  func.func @transform_7(%arg0: i32) -> (i32, i32) {
    %c0_i32 = arith.constant 0 : i32
    %c0_i32_0 = arith.constant 0 : i32
    %c0_i32_1 = arith.constant 0 : i32
    return %c0_i32, %c0_i32_0 : i32, i32
  }
  func.func @transform_8(%arg0: i32) -> (i32, i32) {
    %c0_i32 = arith.constant 0 : i32
    %c0_i32_0 = arith.constant 0 : i32
    return %c0_i32, %arg0 : i32, i32
  }
  func.func @transform_9(%arg0: i32) -> (i32, i32) {
    %c0_i32 = arith.constant 0 : i32
    %c0_i32_0 = arith.constant 0 : i32
    return %c0_i32, %arg0 : i32, i32
  }
}

</mosaic_0001>

<bundles_post_ra>
// kernel: tpu_custom_call.1
= control target key start
LH: loop header
LB: loop body
LE: loop exit
PB: predicated region body
PF: predicated region fallthrough
CT: control target
= control target key end

     0   :  { %s742_s0 = inlined_call_operand.vmem [shape: bf16[64,128], index: 0, kind: input, shape index: {}]   ;;  %s743_s1 = inlined_call_operand.vmem [shape: f32[1,128], index: 1, kind: input, shape index: {}]   ;;  %s744_s2 = inlined_call_operand.vmem [shape: bf16[64,64], index: 2, kind: input, shape index: {}]   ;;  %s745_s3 = inlined_call_operand.vmem [shape: f32[64,1], index: 3, kind: input, shape index: {}]   ;;  %s746_s4 = inlined_call_operand.vmem [shape: bf16[32,64], index: 4, kind: input, shape index: {}]   ;;  %s747_s5 = inlined_call_operand.vmem [shape: f32[32,1], index: 5, kind: input, shape index: {}]   ;;  %s748_s6 = inlined_call_operand.vmem [shape: bf16[1,32], index: 6, kind: input, shape index: {}]   ;;  %s749_s7 = inlined_call_operand.<no memory space> [shape: f32[1,1], index: 7, kind: input, shape index: {}]   ;;  %s750_s8 = inlined_call_operand.hbm [shape: f32[1,128], index: 8, kind: output, shape index: {0}]   ;;  %s751_s9 = inlined_call_operand.hbm [shape: f32[1,128], index: 9, kind: output, shape index: {1}]  }
   0x1   :  { %v15_v0 = vstv %s749_s7 }
   0x2   :  { %16 = vst [vmem:[#allocation2] sm:$0x1] %v15_v0 }
   0x3   :  { %17 = vsyncpa [#allocation4], 0  ;;  %v518_v1 = vld [vmem:[%s742_s0] sm:$0xff]   ;;  %v519_v2 = vld [vmem:[%s742_s0 + $0x8] sm:$0xff]   ;;  %v580_v3 = vmov 0   ;;  %vm144_vm0 = vcmask 523264  }
   0x4   :  { %475 = vmatprep.subr.bf16.mxu0 %v518_v1  ;;  %516 = vset.pattern.permute.xlu0 %v580_v3  ;;  %v520_v4 = vld [vmem:[%s742_s0 + $0x10] sm:$0xff]   ;;  %v522_v5 = vld [vmem:[%s744_s2] sm:$0xff]   ;;  %v521_v6 = vld [vmem:[%s742_s0 + $0x18] sm:$0xff]  }
   0x5   :  { %476 = vmatpush3.bf16.msra.mxu0 %v518_v1  ;;  %517 = vset.pattern.permute.xlu1 %v580_v3  ;;  %v52_v7 = vld [vmem:[%s745_s3] sm:$0xff]  ;;  %v54_v8 = vld [vmem:[%s745_s3 + $0x10] sm:$0xff]  ;;  %v53_v9 = vld [vmem:[%s745_s3 + $0x8] sm:$0xff] }
   0x6   :  { %477 = vmatprep.subr.bf16.mxu0 %v519_v2  ;;  %483 = vmatprep.mubr.msk.bf16.mxu0 %vm144_vm0, %v522_v5  ;;  %v55_v10 = vld [vmem:[%s745_s3 + $0x18] sm:$0xff] }
   0x7   :  { %62 = vperm.xlu0 %516, %v52_v7   ;;  %72 = vperm.xlu1 %517, %v54_v8  }
   0x9   :  { %478 = vmatpush3.bf16.msra.mxu0 %v519_v2 }
   0xa   :  { %479 = vmatprep.subr.bf16.mxu0 %v520_v4 }
   0xb   :  { %67 = vperm.xlu0 %516, %v53_v9   ;;  %77 = vperm.xlu1 %517, %v55_v10  }
   0xd   :  { %480 = vmatpush3.bf16.msra.mxu0 %v520_v4 }
   0xe   :  { %481 = vmatprep.subr.bf16.mxu0 %v521_v6 }
   0xf   :  { %18 = vsyncpa [#allocation6], 0  ;;  %v523_v11 = vld [vmem:[%s744_s2 + $0x8] sm:$0xff]   ;;  %v56_v12 = vld [vmem:[%s745_s3 + $0x20] sm:$0xff]  ;;  %v581_v61 = vmov 0.0   ;;  %vm582_vm1 = vmmov 0  }
  0x10   :  { %v57_v13 = vld [vmem:[%s745_s3 + $0x28] sm:$0xff]  ;;  %v524_v14 = vld [vmem:[%s744_s2 + $0x10] sm:$0xff]   ;;  %82 = vperm.xlu0 %516, %v56_v12   ;;  %v59_v16 = vld [vmem:[%s745_s3 + $0x38] sm:$0xff]  ;;  %vm344_vm2 = vcmask 261120   ;;  %s583_s28 = smov [#allocation5]  }
  0x11   :  { %482 = vmatpush3.bf16.msra.mxu0 %v521_v6  ;;  %87 = vperm.xlu1 %517, %v57_v13   ;;  %v58_v15 = vld [vmem:[%s745_s3 + $0x30] sm:$0xff]  ;;  %v525_v17 = vld [vmem:[%s744_s2 + $0x18] sm:$0xff]   ;;  %v238_v18 = vld [vmem:[%s747_s5] sm:$0xff]  ;;  %s428_s29 = sshll.u32 %s583_s28, 4  ;;  %s429_s29 = int_to_ptr.vmem [resolvable:$true] %s428_s29 }
  0x12   :  { %v239_v19 = vld [vmem:[%s747_s5 + $0x8] sm:$0xff]  ;;  %v240_v20 = vld [vmem:[%s747_s5 + $0x10] sm:$0xff]  ;;  %v241_v21 = vld [vmem:[%s747_s5 + $0x18] sm:$0xff]  ;;  %s536_s11 = scalar_lea.vmem %s429_s29, 32  ;;  %p537_p1 = scmp.lt.s32.totalorder %s429_s29, %s429_s29 }
  0x13   :  { %v334_v22 = vld [vmem:[#allocation2] sm:$0x1]  ;;  %v527_v60 = vld [vmem:[%s746_s4 + $0x8] sm:$0xff]  }
  0x14   :  { %484 = vmatmul.mubr.msk.bf16.vlgmr.msra.gmra.mrb[0].mxu0 %vm144_vm0, %v523_v11  ;;  %92 = vperm.xlu0 %516, %v58_v15   ;;  %v526_v23 = vld [vmem:[%s746_s4] sm:$0xff]  }
  0x15   :  { %487 = vmatprep.mubr.msk.bf16.mxu0 %vm144_vm0, %v524_v14  ;;  %97 = vperm.xlu1 %517, %v59_v16   ;;  %v331_v16 = vld [vmem:[%s748_s6] sm:$0x1]  ;;  %s532_s6 = scalar_lea.vmem %s429_s29, 16 }
  0x16   :  { %499 = vmatprep.mubr.msk.bf16.mxu1 %vm144_vm0, %v526_v23  ;;  %p533_p0 = scmp.ne.s32.totalorder %s429_s29, %s532_s6  ;;  %p538_p2 = scmp.lt.s32.totalorder %s536_s11, %s532_s6 }
  0x18   :  { %244 = vperm.xlu0 %516, %v238_v18   ;;  %p539_p3 = por %p538_p2, %p537_p1 }
  0x19   :  { %249 = vperm.xlu1 %517, %v239_v19  }
  0x1a   :  { %p540_p4 = pnand %p539_p3, %p533_p0 }
  0x1c   :  { %488 = vmatmul.mubr.msk.bf16.gmra.mrb[4].mxu0 %vm144_vm0, %v525_v17  ;;  %254 = vperm.xlu0 %516, %v240_v20   ;;  %v340_v17 = vlaneseq }
  0x1d   :  { %259 = vperm.xlu1 %517, %v241_v21  }
  0x1e   :  { %v341_v18 = vshrl.u32 %v340_v17, 7  ;;  %v390_v21 = vand.u32 127, %v340_v17 }
  0x20   :  { %337 = vperm.xlu0 %516, %v334_v22   ;;  %v342_v19 = vsub.s32 0, %v341_v18  ;;  %vm393_vm3 = vcmp.lt.s32.totalorder %v390_v21, 48 }
  0x86   :  { %v63_v24 = vpop.permute.xlu0 %62  ;;  %v73_v25 = vpop.permute.xlu1 %72 }
  0x8a   :  { %v68_v26 = vpop.permute.xlu0 %67  ;;  %v78_v27 = vpop.permute.xlu1 %77 }
  0x8f   :  { %v83_v31 = vpop.permute.xlu0 %82 }
  0x90   :  { %v88_v36 = vpop.permute.xlu1 %87 }
  0x93   :  { %v93_v43 = vpop.permute.xlu0 %92 }
  0x94   :  { %v98_v48 = vpop.permute.xlu1 %97 }
  0x97   :  { %v245_v62 = vpop.permute.xlu0 %244 }
  0x98   :  { %v250_v63 = vpop.permute.xlu1 %249 }
  0x9b   :  { %v255_v0 = vpop.permute.xlu0 %254 }
  0x9c   :  { %v260_v4 = vpop.permute.xlu1 %259 }
  0x9f   :  { %v338_v20 = vpop.permute.xlu0 %337 }
  0xa0   :  { %v343_v22 = vrot.slane %v338_v20, %v342_v19 }
  0xe7   :  { %v485_v28 = vpop.f32.mrb[0].mxu0 }
  0xe8   :  { %v200_v29 = vadd.f32 %v485_v28, %v73_v25  ;;  %v191_v30 = vpop.f32.mrb[1].mxu0 }
  0xe9   :  { %v192_v32 = vadd.f32 %v191_v30, %v63_v24  ;;  %v486_v33 = vpop.f32.mrb[2].mxu0  ;;  %v394_v24 = vld [vmem:[%s743_s1] sm:$0x1] }
  0xea   :  { %v203_v34 = vadd.f32 %v486_v33, %v78_v27  ;;  %v194_v35 = vpop.f32.mrb[3].mxu0  ;;  %v224_v38 = vmax.f32 %v200_v29, 0.0 }
  0xeb   :  { %v195_v37 = vadd.f32 %v194_v35, %v68_v26  ;;  %v222_v40 = vmax.f32 %v192_v32, 0.0 }
  0xec   :  { %v225_v39 = vmax.f32 %v203_v34, 0.0 }
  0xed   :  { %v223_v41 = vmax.f32 %v195_v37, 0.0 }
  0xee   :  { %v235_v42 = vpack.c.bf16 %v225_v39, %v224_v38 }
  0xef   :  { %v489_v44 = vpop.f32.mrb[4].mxu0  ;;  %v234_v45 = vpack.c.bf16 %v223_v41, %v222_v40 }
  0xf0   :  { %v216_v46 = vadd.f32 %v489_v44, %v93_v43  ;;  %v207_v47 = vpop.f32.mrb[5].mxu0 }
  0xf1   :  { %v208_v49 = vadd.f32 %v207_v47, %v83_v31  ;;  %v490_v50 = vpop.f32.mrb[6].mxu0  ;;  %491 = vmatprep.subr.bf16.mxu1 %v234_v45 }
  0xf2   :  { %v219_v51 = vadd.f32 %v490_v50, %v98_v48  ;;  %v210_v52 = vpop.f32.mrb[7].mxu0  ;;  %492 = vmatpush3.bf16.msra.mxu1 %v234_v45  ;;  %v228_v54 = vmax.f32 %v216_v46, 0.0 }
  0xf3   :  { %v211_v53 = vadd.f32 %v210_v52, %v88_v36  ;;  %493 = vmatprep.subr.bf16.mxu1 %v235_v42  ;;  %v226_v56 = vmax.f32 %v208_v49, 0.0 }
  0xf4   :  { %v229_v55 = vmax.f32 %v219_v51, 0.0 }
  0xf5   :  { %v227_v57 = vmax.f32 %v211_v53, 0.0 }
  0xf6   :  { %v237_v58 = vpack.c.bf16 %v229_v55, %v228_v54  ;;  %494 = vmatpush3.bf16.msra.mxu1 %v235_v42 }
  0xf7   :  { %v236_v59 = vpack.c.bf16 %v227_v57, %v226_v56 }
  0xf9   :  { %495 = vmatprep.subr.bf16.mxu1 %v236_v59 }
  0xfa   :  { %496 = vmatpush3.bf16.msra.mxu1 %v236_v59 }
  0xfb   :  { %497 = vmatprep.subr.bf16.mxu1 %v237_v58 }
  0xfe   :  { %498 = vmatpush3.bf16.msra.mxu1 %v237_v58 }
  0xff   :  { %503 = vmatprep.subr.bf16.mxu1 %v581_v61 }
 0x101   :  { %500 = vmatmul.mubr.msk.bf16.vlgmr.msra.gmra.mrb[0].mxu1 %vm144_vm0, %v527_v60 }
 0x102   :  { %507 = vmatprep.mubr.msk.bf16.mxu1 %vm582_vm1, %v581_v61 }
 0x1d4   :  { %v501_v1 = vpop.f32.mrb[0].mxu1 }
 0x1d5   :  { %v321_v2 = vadd.f32 %v501_v1, %v255_v0  ;;  %v312_v3 = vpop.f32.mrb[1].mxu1 }
 0x1d6   :  { %v313_v5 = vadd.f32 %v312_v3, %v245_v62  ;;  %v502_v6 = vpop.f32.mrb[2].mxu1 }
 0x1d7   :  { %v324_v7 = vadd.f32 %v502_v6, %v260_v4  ;;  %v315_v8 = vpop.f32.mrb[3].mxu1  ;;  %v329_v10 = vmax.f32 %v321_v2, 0.0 }
 0x1d8   :  { %v316_v9 = vadd.f32 %v315_v8, %v250_v63  ;;  %v327_v12 = vmax.f32 %v313_v5, 0.0 }
 0x1d9   :  { %v330_v11 = vmax.f32 %v324_v7, 0.0 }
 0x1da   :  { %v328_v13 = vmax.f32 %v316_v9, 0.0 }
 0x1db   :  { %v333_v14 = vpack.c.bf16 %v330_v11, %v329_v10 }
 0x1dc   :  { %v332_v15 = vpack.c.bf16 %v328_v13, %v327_v12 }
 0x1de   :  { %504 = vmatpush3.bf16.msra.mxu1 %v332_v15 }
 0x1df   :  { %505 = vmatprep.subr.bf16.mxu1 %v581_v61 }
 0x1e2   :  { %506 = vmatpush3.bf16.msra.mxu1 %v333_v14 }
 0x1e5   :  { %508 = vmatmul.mubr.msk.bf16.vlgmr.msra.gmra.mrb[4].mxu1 %vm344_vm2, %v331_v16 }
 0x2b8   :  { %v382_v23 = vpop.f32.mrb[4].mxu1 }
 0x2b9   :  { %v383_v25 = vadd.f32 %v382_v23, %v343_v22  ;;  %v509_v26 = vpop.f32.mrb[5].mxu1 }
 0x2ba   :  { %v385_v27 = vpop.f32.mrb[6].mxu1 }
 0x2bb   :  { %v395_v28 = vadd.f32 %v394_v24, %v383_v25  ;;  %v510_v29 = vpop.f32.mrb[7].mxu1  ;;  %v410_v30 = vsel %vm393_vm3, %v383_v25, 0.0 }
 0x2bc   :  { %411 = vst [vmem:[#allocation5] sm:$0x1] %v410_v30 }
 0x2bd   :  { %v457_v31 = vmul.f32 -2.0, %v395_v28 }
 0x2be   :  { %543 = shalt.err (!%p540_p4)
}
 0x2bf   :  { %s544_s13 = scalar_lea.hbm %s751_s9, 16 }
 0x2c0   :  { %p545_p5 = scmp.ne.s32.totalorder %s751_s9, %s544_s13  ;;  %p548_p6 = scmp.lt.u32.totalorder %s544_s13, %s751_s9 }
 0x2c2   :  { %p550_p7 = pnand %p548_p6, %p545_p5 }
 0x2c4   :  { %553 = shalt.err (!%p550_p7)
}
 0x2c5   :  { %431 = dma.vmem_to_hbm [thread:$0]  %s429_s29, 16, %s751_s9, [#allocation6]   ;;  %v399_v32 = vmul.f32 1.442695, %v457_v31 }
 0x2c6   :  { %s584_s19 = smov [#allocation3]  }
 0x2c7   :  { %528 = vpow2.f32 %v399_v32  ;;  %s418_s20 = sshll.u32 %s584_s19, 4  ;;  %s419_s20 = int_to_ptr.vmem [resolvable:$true] %s418_s20 }
 0x2c8   :  { %s554_s21 = scalar_lea.vmem %s419_s20, 16  ;;  %s558_s22 = scalar_lea.vmem %s419_s20, 32 }
 0x2c9   :  { %p555_p8 = scmp.ne.s32.totalorder %s419_s20, %s554_s21  ;;  %p559_p9 = scmp.lt.s32.totalorder %s419_s20, %s419_s20 }
 0x2ca   :  { %p560_p10 = scmp.lt.s32.totalorder %s558_s22, %s554_s21 }
 0x2cc   :  { %p561_p11 = por %p560_p10, %p559_p9 }
 0x2ce   :  { %p562_p12 = pnand %p561_p11, %p555_p8 }
 0x2d1   :  { %v529_v33 = vpop.eup %528 }
 0x2d2   :  { %v401_v34 = vadd.f32 1.0, %v529_v33 }
 0x2d4   :  { %530 = vrcp.f32 %v401_v34 }
 0x2de   :  { %v531_v35 = vpop.eup %530 }
 0x2df   :  { %v404_v36 = vmul.f32 1.5, %v531_v35 }
 0x2e1   :  { %v405_v37 = vadd.f32 -0.45, %v404_v36 }
 0x2e3   :  { %v406_v38 = vmax.f32 %v405_v37, 0.0 }
 0x2e5   :  { %v407_v39 = vmin.f32 %v406_v38, 1.0 }
 0x2e7   :  { %v408_v40 = vsel %vm393_vm3, %v407_v39, 0.0 }
 0x2e8   :  { %409 = vst [vmem:[#allocation3] sm:$0x1] %v408_v40 }
 0x2e9   :  { %565 = shalt.err (!%p562_p12)
}
 0x2ea   :  { %s566_s23 = scalar_lea.hbm %s750_s8, 16 }
 0x2eb   :  { %p567_p13 = scmp.ne.s32.totalorder %s750_s8, %s566_s23  ;;  %p570_p0 = scmp.lt.u32.totalorder %s566_s23, %s750_s8 }
 0x2ed   :  { %p572_p1 = pnand %p570_p0, %p567_p13 }
 0x2ef   :  { %575 = shalt.err (!%p572_p1)
}
 0x2f0   :  { %421 = dma.vmem_to_hbm [thread:$0]  %s419_s20, 16, %s750_s8, [#allocation4]  }
 0x2f1   :  { %576 = dma.done.wait [#allocation4], 16  }
 0x2f2   :  { %577 = vsyncadd [#allocation4], 4294967280 }
 0x2f3   :  { %578 = dma.done.wait [#allocation6], 16  }
 0x2f4   :  { %579 = vsyncadd [#allocation6], 4294967280 }
 0x2f5   :  { %438 = vsyncpa [#allocation4], 1 }
 0x2f6   :  { %439 = vsyncpa [#allocation6], 1 }

</bundles_post_ra>
